<compile_context>
chip_gen: v7x
topology: tpu7x:2x2x1
jax: 0.10.0
libtpu: 0.0.40
codegen_flags: <defaults>
</compile_context>

<pallas_src>
import math
import functools

import jax
import jax.numpy as jnp
from jax.experimental import pallas as pl
from jax.experimental.pallas import tpu as pltpu

_HALF_LOG_2PI = 0.5 * math.log(2.0 * math.pi)
_LANES = 128            # packed lane width for all slabs / the output
_ROW_ALIGN = 16         # bf16 sublane packing: keep slab sections 16-row aligned


def _actor_critic_kernel(state_ref, eps_ref, w_ref, vec_ref, out_ref, *,
                         s_dim, s_pad, a_dim):
    x = state_ref[...]            # (B, S)   f32, lane-sparse on purpose
    eps = eps_ref[...]            # (B, 128) f32, eps in lanes [0:A], 0 elsewhere
    v = vec_ref[...]              # (8, 128) f32 -- one vreg of per-lane constants

    b_in = v[0:1, :]              # input_fc bias (padded)
    b_hid = v[1:2, :]             # [actor_fc_1 bias | critic_fc_1 bias] (padded)
    b_out = v[2:3, :]             # actor_output bias in [0:A], critic_output bias at 2A
    std_row = v[3:4, :]           # std in [0:A], 0 elsewhere
    coef_row = v[4:5, :]          # -0.5 in [A:2A], 0 elsewhere
    logc_row = v[5:6, :]          # -(log(std)+0.5*log(2pi)) in [A:2A], 0 elsewhere
    lo_row = v[6:7, :]            # -1 in [0:A], -inf elsewhere
    hi_row = v[7:8, :]            # +1 in [0:A], +inf elsewhere

    # Static, zero-cost sub-views of the coalesced bf16 weight slab.
    w_in = w_ref[0:s_dim, :]                              # (S,   128) bf16
    w_hid = w_ref[s_pad:s_pad + _LANES, :]                # (128, 128) bf16
    w_out = w_ref[s_pad + _LANES:s_pad + 2 * _LANES, :]   # (128, 128) bf16

    # shared trunk: input_ = relu(input_fc(state))                     -> (B, 128)
    h = jnp.dot(x.astype(jnp.bfloat16), w_in, preferred_element_type=jnp.float32)
    h = jnp.maximum(h + b_in, 0.0)

    # fused hidden: [relu(actor_fc_1(h)) | relu(critic_fc_1(h))]       -> (B, 128)
    ac = jnp.dot(h.astype(jnp.bfloat16), w_hid, preferred_element_type=jnp.float32)
    ac = jnp.maximum(ac + b_hid, 0.0)

    # fused output heads: mean in lanes [0:A], state_value at lane 2A, 0 elsewhere
    mv = jnp.dot(ac.astype(jnp.bfloat16), w_out,
                 preferred_element_type=jnp.float32) + b_out

    # sample + clamp (clamp only touches lanes [0:A]; other lanes pass through ±inf)
    acts = mv + std_row * eps
    acts = jnp.minimum(jnp.maximum(acts, lo_row), hi_row)

    # log_prob = -0.5*eps^2 - log(std) - 0.5*log(2*pi), placed in lanes [A:2A].
    # eps lives in lanes [0:A]; shift it into [A:2A] on the XLU (free slot here).
    eps_lp = pltpu.roll(eps, shift=a_dim, axis=1)
    logp = coef_row * (eps_lp * eps_lp) + logc_row

    out_ref[...] = acts + logp    # single lane-dense (B, 128) unmasked store


@functools.partial(jax.jit, static_argnames=("action_dim",))
def actor_critic_forward(state, eps, packed, action_dim):
    """state: (B, state_dim) f32; eps: (B, action_dim) f32 standard normal."""
    B, S = state.shape
    A = action_dim
    S_pad = -(-S // _ROW_ALIGN) * _ROW_ALIGN

    # eps into lanes [0:A] of a lane-dense (B,128) slab; the [A:2A] copy is made
    # in-kernel with pltpu.roll (no wrapper-side duplication/concat).
    eps_slab = jnp.pad(eps, ((0, 0), (0, _LANES - A)))

    kernel = functools.partial(_actor_critic_kernel,
                               s_dim=S, s_pad=S_pad, a_dim=A)
    vmem = pl.BlockSpec(memory_space=pltpu.MemorySpace.VMEM)
    out = pl.pallas_call(
        kernel,
        out_shape=jax.ShapeDtypeStruct((B, _LANES), jnp.float32),
        in_specs=[vmem] * 4,
        out_specs=vmem,
    )(state, eps_slab, packed["w"], packed["vec"])

    actions = out[:, 0:A]
    log_prob = out[:, A:2 * A]
    state_value = out[:, 2 * A:2 * A + 1]
    # entropy is batch-independent; broadcast outside the kernel.
    entropy = jnp.broadcast_to(
        0.5 + _HALF_LOG_2PI + jnp.log(packed["std"]), (B, A))
    return actions, log_prob, entropy, state_value


def init_params(key, state_dim, action_dim, hidden_actor, hidden_critic):
    """Deterministic init mirroring the module's reset_parameters().
    Weights are stored pre-transposed as (in_features, out_features)."""
    ks = jax.random.split(key, 12)

    def uniform(k, shape, lim):
        return jax.random.uniform(k, shape, jnp.float32, -lim, lim)

    def lim_hidden(out_features):  # hidden_init uses weight.size()[0] = out_features
        return 1.0 / math.sqrt(out_features)

    p = {}
    p["w_in"] = uniform(ks[0], (state_dim, hidden_actor[0]), lim_hidden(hidden_actor[0]))
    p["b_in"] = uniform(ks[1], (1, hidden_actor[0]), 1.0 / math.sqrt(state_dim))
    p["w_a1"] = uniform(ks[2], (hidden_actor[0], hidden_actor[1]), lim_hidden(hidden_actor[1]))
    p["b_a1"] = uniform(ks[3], (1, hidden_actor[1]), 1.0 / math.sqrt(hidden_actor[0]))
    p["w_ao"] = uniform(ks[4], (hidden_actor[1], action_dim), 0.003)
    p["b_ao"] = uniform(ks[5], (1, action_dim), 1.0 / math.sqrt(hidden_actor[1]))
    p["w_c1"] = uniform(ks[6], (hidden_critic[0], hidden_critic[1]), lim_hidden(hidden_critic[1]))
    p["b_c1"] = uniform(ks[7], (1, hidden_critic[1]), 1.0 / math.sqrt(hidden_critic[0]))
    p["w_co"] = uniform(ks[8], (hidden_critic[1], 1), 0.003)
    p["b_co"] = uniform(ks[9], (1, 1), 1.0 / math.sqrt(hidden_critic[1]))
    p["std"] = jnp.ones((1, action_dim), jnp.float32)
    return p


def pack_params(p):
    """Pack raw params into one bf16 weight slab + one f32 constants vreg."""
    S, H0 = p["w_in"].shape
    H0c, H1c = p["w_c1"].shape
    H1a = p["w_a1"].shape[1]
    A = p["w_ao"].shape[1]
    assert H0c == H0, "critic_fc_1 consumes input_ => hidden_critic[0] == hidden_actor[0]"
    assert H0 <= _LANES and H1a + H1c <= _LANES and 2 * A + 1 <= _LANES
    S_pad = -(-S // _ROW_ALIGN) * _ROW_ALIGN

    # Coalesced weight slab (single DMA), rows:
    #   [0 : S)                   w_in   (cols [0:H0])
    #   [S_pad : S_pad+128)       w_hid  = [actor_fc_1 | critic_fc_1]
    #   [S_pad+128 : S_pad+256)   w_out  = block(actor_output -> cols [0:A],
    #                                            critic_output -> col 2A)
    w = jnp.zeros((S_pad + 2 * _LANES, _LANES), jnp.float32)
    w = w.at[:S, :H0].set(p["w_in"])
    w = w.at[S_pad:S_pad + H0, :H1a].set(p["w_a1"])
    w = w.at[S_pad:S_pad + H0, H1a:H1a + H1c].set(p["w_c1"])
    w = w.at[S_pad + _LANES:S_pad + _LANES + H1a, :A].set(p["w_ao"])
    w = w.at[S_pad + _LANES + H1a:S_pad + _LANES + H1a + H1c,
             2 * A:2 * A + 1].set(p["w_co"])
    w = w.astype(jnp.bfloat16)   # MXU-native; halves weight DMA bytes

    # Constants vreg stays f32 (biases, std, ±inf clamp rows, log-prob constants).
    vec = jnp.zeros((8, _LANES), jnp.float32)
    vec = vec.at[0, :H0].set(p["b_in"][0])
    vec = vec.at[1, :H1a].set(p["b_a1"][0])
    vec = vec.at[1, H1a:H1a + H1c].set(p["b_c1"][0])
    vec = vec.at[2, :A].set(p["b_ao"][0])
    vec = vec.at[2, 2 * A].set(p["b_co"][0, 0])
    vec = vec.at[3, :A].set(p["std"][0])
    vec = vec.at[4, A:2 * A].set(-0.5)
    vec = vec.at[5, A:2 * A].set(-(jnp.log(p["std"][0]) + _HALF_LOG_2PI))
    vec = vec.at[6, :].set(-jnp.inf).at[6, :A].set(-1.0)
    vec = vec.at[7, :].set(jnp.inf).at[7, :A].set(1.0)

    return {"w": w, "vec": vec, "std": p["std"]}


def _reference_forward(state, eps, p, *, bf16_matmul=False):
    """Pure-JAX reference matching the PyTorch module.
    bf16_matmul=True mirrors the kernel's bf16-operand / f32-accumulate matmuls."""
    hp = jax.lax.Precision.HIGHEST

    def mm(a, w):
        if bf16_matmul:
            return jnp.dot(a.astype(jnp.bfloat16), w.astype(jnp.bfloat16),
                           preferred_element_type=jnp.float32)
        return jnp.dot(a, w, precision=hp)

    h = jax.nn.relu(mm(state, p["w_in"]) + p["b_in"])
    a1 = jax.nn.relu(mm(h, p["w_a1"]) + p["b_a1"])
    mean = mm(a1, p["w_ao"]) + p["b_ao"]
    c1 = jax.nn.relu(mm(h, p["w_c1"]) + p["b_c1"])
    value = mm(c1, p["w_co"]) + p["b_co"]
    std = p["std"]
    actions = mean + std * eps
    logp = -((actions - mean) ** 2) / (2.0 * std * std) - jnp.log(std) - _HALF_LOG_2PI
    ent = jnp.broadcast_to(0.5 + _HALF_LOG_2PI + jnp.log(std), mean.shape)
    return jnp.clip(actions, -1.0, 1.0), logp, ent, value


if __name__ == "__main__":
    # Small shapes consistent with the module's forward
    # (hidden_critic[0] must equal hidden_actor[0]).
    B, state_dim, action_dim = 8, 16, 4
    hidden_actor = (32, 32)
    hidden_critic = (32, 32)

    key = jax.random.PRNGKey(0)
    k_params, k_state, k_eps = jax.random.split(key, 3)

    raw = init_params(k_params, state_dim, action_dim, hidden_actor, hidden_critic)
    packed = pack_params(raw)
    state = jax.random.normal(k_state, (B, state_dim), jnp.float32)
    eps = jax.random.normal(k_eps, (B, action_dim), jnp.float32)

    actions, log_prob, entropy, state_value = actor_critic_forward(
        state, eps, packed, action_dim=action_dim)
    jax.block_until_ready((actions, log_prob, entropy, state_value))

    # shape / range checks
    assert actions.shape == (B, action_dim)
    assert log_prob.shape == (B, action_dim)
    assert entropy.shape == (B, action_dim)
    assert state_value.shape == (B, 1)
    assert bool(jnp.all(actions <= 1.0)) and bool(jnp.all(actions >= -1.0))

    # tight check vs a reference that mirrors the kernel's bf16-operand matmuls
    ta, tl, te, tv = _reference_forward(state, eps, raw, bf16_matmul=True)
    for got, want in ((actions, ta), (log_prob, tl), (entropy, te), (state_value, tv)):
        assert bool(jnp.allclose(got, want, rtol=1e-4, atol=1e-4)), \
            "mismatch vs bf16-operand reference"

    # loose check vs the full-f32 PyTorch-equivalent reference
    # (difference is purely the bf16 rounding of the matmul operands)
    ra, rl, re, rv = _reference_forward(state, eps, raw, bf16_matmul=False)
    for got, want in ((actions, ra), (log_prob, rl), (entropy, re), (state_value, rv)):
        assert bool(jnp.allclose(got, want, rtol=2e-2, atol=2e-2)), \
            "mismatch vs f32 reference"

    print("KERNEL_OK")
</pallas_src>

<mosaic_0001>
module attributes {stable_mosaic.version = 11 : i64} {
  func.func @_actor_critic_kernel(%arg0: memref<8x16xf32, #tpu.memory_space<vmem>>, %arg1: memref<8x128xf32, #tpu.memory_space<vmem>>, %arg2: memref<272x128xbf16, #tpu.memory_space<vmem>>, %arg3: memref<8x128xf32, #tpu.memory_space<vmem>>, %arg4: memref<8x128xf32, #tpu.memory_space<vmem>>) attributes {dimension_semantics = [], scalar_prefetch = 0 : i64, scratch_operands = 0 : i64, tpu.core_type = #tpu.core_type<tc>} {
    %c0 = arith.constant 0 : index
    %c0_0 = arith.constant 0 : index
    %0 = vector.load %arg0[%c0, %c0_0] : memref<8x16xf32, #tpu.memory_space<vmem>>, vector<8x16xf32>
    %c0_1 = arith.constant 0 : index
    %c0_2 = arith.constant 0 : index
    %1 = vector.load %arg1[%c0_1, %c0_2] : memref<8x128xf32, #tpu.memory_space<vmem>>, vector<8x128xf32>
    %c0_3 = arith.constant 0 : index
    %c0_4 = arith.constant 0 : index
    %2 = vector.load %arg3[%c0_3, %c0_4] : memref<8x128xf32, #tpu.memory_space<vmem>>, vector<8x128xf32>
    %3 = vector.extract_strided_slice %2 {offsets = [0, 0], sizes = [1, 128], strides = [1, 1]} : vector<8x128xf32> to vector<1x128xf32>
    %4 = vector.extract_strided_slice %2 {offsets = [1, 0], sizes = [1, 128], strides = [1, 1]} : vector<8x128xf32> to vector<1x128xf32>
    %5 = vector.extract_strided_slice %2 {offsets = [2, 0], sizes = [1, 128], strides = [1, 1]} : vector<8x128xf32> to vector<1x128xf32>
    %6 = vector.extract_strided_slice %2 {offsets = [3, 0], sizes = [1, 128], strides = [1, 1]} : vector<8x128xf32> to vector<1x128xf32>
    %7 = vector.extract_strided_slice %2 {offsets = [4, 0], sizes = [1, 128], strides = [1, 1]} : vector<8x128xf32> to vector<1x128xf32>
    %8 = vector.extract_strided_slice %2 {offsets = [5, 0], sizes = [1, 128], strides = [1, 1]} : vector<8x128xf32> to vector<1x128xf32>
    %9 = vector.extract_strided_slice %2 {offsets = [6, 0], sizes = [1, 128], strides = [1, 1]} : vector<8x128xf32> to vector<1x128xf32>
    %10 = vector.extract_strided_slice %2 {offsets = [7, 0], sizes = [1, 128], strides = [1, 1]} : vector<8x128xf32> to vector<1x128xf32>
    %c0_5 = arith.constant 0 : index
    %c0_6 = arith.constant 0 : index
    %11 = vector.load %arg2[%c0_5, %c0_6] : memref<272x128xbf16, #tpu.memory_space<vmem>>, vector<16x128xbf16>
    %c16 = arith.constant 16 : index
    %c0_7 = arith.constant 0 : index
    %12 = vector.load %arg2[%c16, %c0_7] : memref<272x128xbf16, #tpu.memory_space<vmem>>, vector<128x128xbf16>
    %c144 = arith.constant 144 : index
    %c0_8 = arith.constant 0 : index
    %13 = vector.load %arg2[%c144, %c0_8] : memref<272x128xbf16, #tpu.memory_space<vmem>>, vector<128x128xbf16>
    %14 = arith.truncf %0 : vector<8x16xf32> to vector<8x16xbf16>
    %cst = arith.constant dense<0.000000e+00> : vector<8x128xf32>
    %15 = tpu.matmul %14, %11, %cst {dimension_numbers = #tpu.dot_dimension_numbers<[1], [0], [0], [1], [0, 0, 1, 1], [], []>} : vector<8x16xbf16>, vector<16x128xbf16>, vector<8x128xf32> -> vector<8x128xf32>
    %16 = vector.broadcast %3 : vector<1x128xf32> to vector<8x128xf32>
    %17 = arith.addf %15, %16 : vector<8x128xf32>
    %cst_9 = arith.constant 0.000000e+00 : f32
    %18 = vector.broadcast %cst_9 : f32 to vector<8x128xf32>
    %19 = arith.maximumf %17, %18 : vector<8x128xf32>
    %20 = arith.truncf %19 : vector<8x128xf32> to vector<8x128xbf16>
    %cst_10 = arith.constant dense<0.000000e+00> : vector<8x128xf32>
    %21 = tpu.matmul %20, %12, %cst_10 {dimension_numbers = #tpu.dot_dimension_numbers<[1], [0], [0], [1], [0, 0, 1, 1], [], []>} : vector<8x128xbf16>, vector<128x128xbf16>, vector<8x128xf32> -> vector<8x128xf32>
    %22 = vector.broadcast %4 : vector<1x128xf32> to vector<8x128xf32>
    %23 = arith.addf %21, %22 : vector<8x128xf32>
    %cst_11 = arith.constant 0.000000e+00 : f32
    %24 = vector.broadcast %cst_11 : f32 to vector<8x128xf32>
    %25 = arith.maximumf %23, %24 : vector<8x128xf32>
    %26 = arith.truncf %25 : vector<8x128xf32> to vector<8x128xbf16>
    %cst_12 = arith.constant dense<0.000000e+00> : vector<8x128xf32>
    %27 = tpu.matmul %26, %13, %cst_12 {dimension_numbers = #tpu.dot_dimension_numbers<[1], [0], [0], [1], [0, 0, 1, 1], [], []>} : vector<8x128xbf16>, vector<128x128xbf16>, vector<8x128xf32> -> vector<8x128xf32>
    %28 = vector.broadcast %5 : vector<1x128xf32> to vector<8x128xf32>
    %29 = arith.addf %27, %28 : vector<8x128xf32>
    %30 = vector.broadcast %6 : vector<1x128xf32> to vector<8x128xf32>
    %31 = arith.mulf %30, %1 : vector<8x128xf32>
    %32 = arith.addf %29, %31 : vector<8x128xf32>
    %33 = vector.broadcast %9 : vector<1x128xf32> to vector<8x128xf32>
    %34 = arith.maximumf %32, %33 : vector<8x128xf32>
    %35 = vector.broadcast %10 : vector<1x128xf32> to vector<8x128xf32>
    %36 = arith.minimumf %34, %35 : vector<8x128xf32>
    %c4_i32 = arith.constant 4 : i32
    %37 = tpu.dynamic_rotate %1 by %c4_i32 dim 1 : vector<8x128xf32>, i32 -> vector<8x128xf32>
    %38 = arith.mulf %37, %37 : vector<8x128xf32>
    %39 = vector.broadcast %7 : vector<1x128xf32> to vector<8x128xf32>
    %40 = arith.mulf %39, %38 : vector<8x128xf32>
    %41 = vector.broadcast %8 : vector<1x128xf32> to vector<8x128xf32>
    %42 = arith.addf %40, %41 : vector<8x128xf32>
    %43 = arith.addf %36, %42 : vector<8x128xf32>
    %c0_13 = arith.constant 0 : index
    %c0_14 = arith.constant 0 : index
    %44 = vector.load %arg4[%c0_13, %c0_14] : memref<8x128xf32, #tpu.memory_space<vmem>>, vector<8x128xf32>
    tpu.vector_store %arg4[%c0_13, %c0_14], %43 {strides = array<i32>} : memref<8x128xf32, #tpu.memory_space<vmem>>, vector<8x128xf32>,
    return
  }
}

</mosaic_0001>

<bundles_post_ra>
// kernel: actor_critic_forward.1
= control target key start
LH: loop header
LB: loop body
LE: loop exit
PB: predicated region body
PF: predicated region fallthrough
CT: control target
= control target key end

     0   :  { %9 = vsyncpa [#allocation3], 0  ;;  %s478_s15 = smov [#allocation2]   ;;  %s554_s0 = inlined_call_operand.vmem [shape: f32[8,16], index: 0, kind: input, shape index: {}]   ;;  %s555_s1 = inlined_call_operand.vmem [shape: f32[8,128], index: 1, kind: input, shape index: {}]   ;;  %s556_s2 = inlined_call_operand.hbm [shape: bf16[272,128], index: 2, kind: input, shape index: {}]   ;;  %s557_s3 = inlined_call_operand.vmem [shape: f32[8,128], index: 3, kind: input, shape index: {}]   ;;  %s558_s4 = inlined_call_operand.vmem [shape: f32[8,128], index: 4, kind: output, shape index: {}]  }
   0x1   :  { %s19_s16 = sshll.u32 %s478_s15, 4  ;;  %s454_s19 = scalar_lea.hbm %s556_s2, 2176  ;;  %s20_s16 = int_to_ptr.vmem [resolvable:$true] %s19_s16 }
   0x2   :  { %p455_p0 = scmp.ne.s32.totalorder %s556_s2, %s454_s19  ;;  %p458_p1 = scmp.lt.u32.totalorder %s454_s19, %s556_s2 }
   0x4   :  { %p460_p2 = pnand %p458_p1, %p455_p0 }
   0x6   :  { %463 = shalt.err (!%p460_p2)
}
   0x7   :  { %s464_s24 = scalar_lea.vmem %s20_s16, 2176  ;;  %p469_p4 = scmp.lt.s32.totalorder %s20_s16, %s20_s16 }
   0x8   :  { %p465_p3 = scmp.ne.s32.totalorder %s20_s16, %s464_s24  ;;  %p470_p5 = scmp.lt.s32.totalorder %s464_s24, %s464_s24 }
   0xa   :  { %p471_p6 = por %p470_p5, %p469_p4 }
   0xc   :  { %p472_p7 = pnand %p471_p6, %p465_p3 }
   0xe   :  { %475 = shalt.err (!%p472_p7)
}
   0xf   :  { %s479_s25 = smov 64   ;;  %s480_s26 = smov 4  }
  0x10   :  { %25 = dma.hbm_to_vmem [thread:$0]  %s556_s2, 2176, %s20_s16, [#allocation3], %s479_s25, %s479_s25, %s480_s26  }
  0x11   :  { %476 = dma.done.wait [#allocation3], 2176  }
  0x12   :  { %477 = vsyncadd [#allocation3], 4294965120  ;;  %v481_v0 = vmov 0.0   ;;  %vm482_vm0 = vmmov 0   ;;  %v437_v1 = vld [vmem:[#allocation2] sm:$0xff]   ;;  %vm80_vm1 = vcmask 130048   ;;  %v70_v18 = vlaneseq }
  0x13   :  { %386 = vmatprep.subr.bf16.mxu0 %v481_v0  ;;  %388 = vmatprep.mubr.msk.bf16.mxu0 %vm482_vm0, %v481_v0  ;;  %v32_v2 = vld [vmem:[%s554_s0] sm:$0xff]  ;;  %v438_v4 = vld [vmem:[#allocation2 + $0x8] sm:$0xff]   ;;  %v439_v5 = vld [vmem:[#allocation2 + $0x10] sm:$0xff]  }
  0x14   :  { %392 = vmatprep.subr.bf16.mxu1 %v481_v0  ;;  %408 = vmatprep.mubr.msk.bf16.mxu1 %vm482_vm0, %v481_v0  ;;  %v69_v3 = vpack.c.bf16 %v32_v2, %v32_v2  ;;  %v440_v6 = vld [vmem:[#allocation2 + $0x18] sm:$0xff]   ;;  %v441_v7 = vld [vmem:[#allocation2 + $0x20] sm:$0xff]   ;;  %v442_v8 = vld [vmem:[#allocation2 + $0x28] sm:$0xff]   ;;  %v71_v19 = vshrl.u32 %v70_v18, 7 }
  0x15   :  { %387 = vmatpush3.bf16.msra.mxu0 %v437_v1  ;;  %393 = vmatpush3.bf16.msra.mxu1 %v438_v4  ;;  %v443_v9 = vld [vmem:[#allocation2 + $0x30] sm:$0xff]   ;;  %v444_v10 = vld [vmem:[#allocation2 + $0x38] sm:$0xff]   ;;  %v445_v11 = vld [vmem:[#allocation2 + $0x40] sm:$0xff]  }
  0x16   :  { %412 = vmatprep.subr.bf16.mxu0 %v481_v0  ;;  %394 = vmatprep.subr.bf16.mxu1 %v481_v0  ;;  %v446_v12 = vld [vmem:[#allocation2 + $0x48] sm:$0xff]   ;;  %v447_v13 = vld [vmem:[#allocation2 + $0x50] sm:$0xff]   ;;  %v448_v14 = vld [vmem:[#allocation2 + $0x58] sm:$0xff]   ;;  %v72_v20 = vsub.s32 0, %v71_v19  ;;  %v128_v33 = vsub.s32 1, %v71_v19  ;;  %v314_v42 = vsub.s32 3, %v71_v19 }
  0x17   :  { %v449_v15 = vld [vmem:[#allocation2 + $0x60] sm:$0xff]   ;;  %v450_v16 = vld [vmem:[#allocation2 + $0x68] sm:$0xff]   ;;  %v451_v17 = vld [vmem:[#allocation2 + $0x70] sm:$0xff]   ;;  %v222_v43 = vsub.s32 2, %v71_v19  ;;  %v333_v44 = vsub.s32 4, %v71_v19  ;;  %v320_v48 = vsub.s32 6, %v71_v19 }
  0x18   :  { %389 = vmatmul.mubr.msk.bf16.vlgmr.msra.gmra.mrb[0].mxu0 %vm80_vm1, %v69_v3  ;;  %v34_v21 = vld [vmem:[%s557_s3] sm:$0xff]  ;;  %v452_v30 = vld [vmem:[#allocation2 + $0x78] sm:$0xff]   ;;  %v338_v51 = vsub.s32 5, %v71_v19  ;;  %v325_v53 = vsub.s32 7, %v71_v19 }
  0x19   :  { %428 = vmatprep.mubr.msk.bf16.mxu0 %vm482_vm0, %v481_v0  ;;  %395 = vmatpush3.bf16.msra.mxu1 %v439_v5  ;;  %v73_v22 = vrot.slane %v34_v21, %v72_v20  ;;  %v453_v31 = vld [vmem:[#allocation2 + $0x80] sm:$0xff]   ;;  %v129_v34 = vrot.slane %v34_v21, %v128_v33  ;;  %v315_v46 = vrot.slane %v34_v21, %v314_v42 }
  0x1a   :  { %396 = vmatprep.subr.bf16.mxu1 %v481_v0  ;;  %413 = vmatpush3.bf16.msra.mxu0 %v446_v12  ;;  %v33_v32 = vld [vmem:[%s555_s1] sm:$0xff]  ;;  %v223_v47 = vrot.slane %v34_v21, %v222_v43  ;;  %v334_v50 = vrot.slane %v34_v21, %v333_v44  ;;  %v321_v56 = vrot.slane %v34_v21, %v320_v48 }
  0x1b   :  { %414 = vmatprep.subr.bf16.mxu0 %v481_v0  ;;  %328 = vrot.lane.b32.xlu0 %v33_v32, %s480_s26  ;;  %v316_v52 = vmul.f32 %v315_v46, %v33_v32  ;;  %v339_v59 = vrot.slane %v34_v21, %v338_v51  ;;  %v326_v62 = vrot.slane %v34_v21, %v325_v53 }
  0x1d   :  { %397 = vmatpush3.bf16.msra.mxu1 %v440_v6 }
  0x1e   :  { %398 = vmatprep.subr.bf16.mxu1 %v481_v0  ;;  %415 = vmatpush3.bf16.msra.mxu0 %v447_v13 }
  0x1f   :  { %416 = vmatprep.subr.bf16.mxu0 %v481_v0 }
  0x21   :  { %399 = vmatpush3.bf16.msra.mxu1 %v441_v7 }
  0x22   :  { %400 = vmatprep.subr.bf16.mxu1 %v481_v0  ;;  %417 = vmatpush3.bf16.msra.mxu0 %v448_v14 }
  0x23   :  { %418 = vmatprep.subr.bf16.mxu0 %v481_v0 }
  0x25   :  { %401 = vmatpush3.bf16.msra.mxu1 %v442_v8 }
  0x26   :  { %402 = vmatprep.subr.bf16.mxu1 %v481_v0  ;;  %419 = vmatpush3.bf16.msra.mxu0 %v449_v15 }
  0x27   :  { %420 = vmatprep.subr.bf16.mxu0 %v481_v0 }
  0x29   :  { %403 = vmatpush3.bf16.msra.mxu1 %v443_v9 }
  0x2a   :  { %404 = vmatprep.subr.bf16.mxu1 %v481_v0  ;;  %421 = vmatpush3.bf16.msra.mxu0 %v450_v16 }
  0x2b   :  { %422 = vmatprep.subr.bf16.mxu0 %v481_v0 }
  0x2d   :  { %405 = vmatpush3.bf16.msra.mxu1 %v444_v10 }
  0x2e   :  { %406 = vmatprep.subr.bf16.mxu1 %v481_v0  ;;  %423 = vmatpush3.bf16.msra.mxu0 %v451_v17 }
  0x2f   :  { %424 = vmatprep.subr.bf16.mxu0 %v481_v0 }
  0x31   :  { %407 = vmatpush3.bf16.msra.mxu1 %v445_v11 }
  0x32   :  { %425 = vmatpush3.bf16.msra.mxu0 %v452_v30 }
  0x33   :  { %426 = vmatprep.subr.bf16.mxu0 %v481_v0 }
  0x36   :  { %427 = vmatpush3.bf16.msra.mxu0 %v453_v31 }
  0x8d   :  { %v329_v45 = vpop.permute.xlu0 %328 }
  0x8e   :  { %v330_v49 = vmul.f32 %v329_v45, %v329_v45 }
  0x90   :  { %v335_v58 = vmul.f32 %v334_v50, %v330_v49 }
  0x92   :  { %v340_v1 = vadd.f32 %v339_v59, %v335_v58 }
  0xeb   :  { %v118_v23 = vpop.f32.mrb[0].mxu0 }
  0xec   :  { %v119_v24 = vadd.f32 %v118_v23, %v73_v22  ;;  %v390_v25 = vpop.f32.mrb[1].mxu0 }
  0xed   :  { %v121_v26 = vpop.f32.mrb[2].mxu0 }
  0xee   :  { %v124_v27 = vmax.f32 %v119_v24, 0.0  ;;  %v391_v28 = vpop.f32.mrb[3].mxu0 }
  0xf0   :  { %v125_v29 = vpack.c.bf16 %v124_v27, %v124_v27 }
  0xf2   :  { %409 = vmatmul.mubr.bf16.vlgmr.msra.gmra.mrb[0].mxu1 %v125_v29 }
 0x1c5   :  { %v212_v35 = vpop.f32.mrb[0].mxu1 }
 0x1c6   :  { %v213_v36 = vadd.f32 %v212_v35, %v129_v34  ;;  %v410_v37 = vpop.f32.mrb[1].mxu1 }
 0x1c7   :  { %v215_v38 = vpop.f32.mrb[2].mxu1 }
 0x1c8   :  { %v218_v39 = vmax.f32 %v213_v36, 0.0  ;;  %v411_v40 = vpop.f32.mrb[3].mxu1 }
 0x1ca   :  { %v219_v41 = vpack.c.bf16 %v218_v39, %v218_v39 }
 0x1cc   :  { %429 = vmatmul.mubr.bf16.vlgmr.msra.gmra.mrb[4].mxu0 %v219_v41 }
 0x29f   :  { %v306_v54 = vpop.f32.mrb[4].mxu0 }
 0x2a0   :  { %v307_v55 = vadd.f32 %v306_v54, %v223_v47  ;;  %v430_v57 = vpop.f32.mrb[5].mxu0 }
 0x2a1   :  { %v309_v60 = vpop.f32.mrb[6].mxu0 }
 0x2a2   :  { %v317_v61 = vadd.f32 %v316_v52, %v307_v55  ;;  %v431_v63 = vpop.f32.mrb[7].mxu0 }
 0x2a4   :  { %v322_v0 = vmax.f32 %v317_v61, %v321_v56 }
 0x2a6   :  { %v327_v2 = vmin.f32 %v322_v0, %v326_v62 }
 0x2a8   :  { %v341_v3 = vadd.f32 %v340_v1, %v327_v2 }
 0x2aa   :  { %342 = vst [vmem:[%s558_s4] sm:$0xff] %v341_v3 }
 0x2ab   :  { %347 = vsyncpa [#allocation3], 1 }

</bundles_post_ra>
